<compile_context>
chip_gen: v5e
topology: v5e:2x2
jax: 0.10.0
libtpu: 0.0.40
codegen_flags: <defaults>
</compile_context>

<pallas_src>
import functools

import jax
import jax.numpy as jnp
from jax.experimental import pallas as pl
from jax.experimental.pallas import tpu as pltpu


def _round_up(x, m):
    return ((x + m - 1) // m) * m


# -----------------------------------------------------------------------------
# Pallas kernel: fused encoders + DCF gating/fusion + decoder, feature-major.
# x_ref is (D_in, tm): one column per (batch, station) row, features on sublanes.
# -----------------------------------------------------------------------------
def _dymfusion_kernel(
    x_ref,
    w_enc_ref, b_enc_ref,        # block-diagonal MAFE + dyn-context encoders
    w_gate_ref, b_gate_ref,      # all three DCF gates in one matrix
    w_f1_ref, b_f1_ref,          # DCF fusion MLP layer 1 (over concat of gated feats)
    w_f2_ref, b_f2_ref,          # DCF fusion MLP layer 2
    w_d1_ref, b_d1_ref,          # predictive decoder layer 1
    w_d2_ref, b_d2_ref,          # predictive decoder layer 2 (no activation)
    out_ref,
    *, n_gated,
):
    relu = lambda v: jnp.maximum(v, 0.0)
    dot = functools.partial(jnp.dot, preferred_element_type=jnp.float32)

    x = x_ref[...]                                                 # (Din, tm)

    # --- MAFE sub-encoders + dyn-context encoder, one block-diagonal matmul.
    #     enc rows = [f_hd ; f_w ; f_p ; cdyn]
    enc = relu(dot(w_enc_ref[...], x) + b_enc_ref[...])            # (3E+C, tm)
    feats = enc[:n_gated, :]                                       # (3E, tm)

    # --- DCF gating: sigmoid(Linear(cat([feat, cdyn]))) * feat for all three
    #     modalities in a single block-structured matmul (cdyn columns shared).
    gates = jax.nn.sigmoid(dot(w_gate_ref[...], enc) + b_gate_ref[...])   # (3E, tm)
    gated = gates * feats                                          # (3E, tm)

    # --- DCF fusion MLP: relu(L2(relu(L1(cat([g_hd, g_w, g_p]))))).
    h1 = relu(dot(w_f1_ref[...], gated) + b_f1_ref[...])           # (2F, tm)
    fused = relu(dot(w_f2_ref[...], h1) + b_f2_ref[...])           # (F,  tm)

    # --- Predictive decoder MLP (no final activation). Output is already
    #     lane-dense: (P*Tg, tm) with the row axis on lanes.
    ph = relu(dot(w_d1_ref[...], fused) + b_d1_ref[...])           # (H,  tm)
    out_ref[...] = dot(w_d2_ref[...], ph) + b_d2_ref[...]          # (P*Tg, tm)


# -----------------------------------------------------------------------------
# Weight packing: module's per-layer weights -> 6 feature-major matrices + biases.
# -----------------------------------------------------------------------------
def pack_params(params):
    f32 = jnp.float32
    E = params["whd"].shape[1]
    C = params["wev"].shape[1]
    Dhd, Dw = params["whd"].shape[0], params["ww"].shape[0]
    Dp, Dev = params["wp"].shape[0], params["wev"].shape[0]
    Din = Dhd + Dw + Dp + Dev

    # Encoders: block-diagonal, stored (out_features, in_features).
    w_enc = jnp.zeros((3 * E + C, Din), f32)
    w_enc = w_enc.at[0:E, 0:Dhd].set(params["whd"].T)
    w_enc = w_enc.at[E:2 * E, Dhd:Dhd + Dw].set(params["ww"].T)
    w_enc = w_enc.at[2 * E:3 * E, Dhd + Dw:Dhd + Dw + Dp].set(params["wp"].T)
    w_enc = w_enc.at[3 * E:, Dhd + Dw + Dp:].set(params["wev"].T)
    b_enc = jnp.concatenate(
        [params["bhd"], params["bw"], params["bp"], params["bev"]], axis=-1).T

    # DCF gates: one (3E, 3E+C) matrix; cdyn columns feed every gate.
    w_gate = jnp.zeros((3 * E, 3 * E + C), f32)
    w_gate = w_gate.at[0:E, 0:E].set(params["ghdf"].T)
    w_gate = w_gate.at[E:2 * E, E:2 * E].set(params["gwf"].T)
    w_gate = w_gate.at[2 * E:3 * E, 2 * E:3 * E].set(params["gpf"].T)
    w_gate = w_gate.at[0:E, 3 * E:].set(params["ghdc"].T)
    w_gate = w_gate.at[E:2 * E, 3 * E:].set(params["gwc"].T)
    w_gate = w_gate.at[2 * E:3 * E, 3 * E:].set(params["gpc"].T)
    b_gate = jnp.concatenate(
        [params["ghdb"], params["gwb"], params["gpb"]], axis=-1).T

    # Fusion MLP layer 1 over concat([g_hd, g_w, g_p]).
    w_f1 = jnp.concatenate([params["f1hd"], params["f1w"], params["f1p"]], axis=0).T
    b_f1 = params["f1b"].T

    weights = [
        w_enc, b_enc, w_gate, b_gate, w_f1, b_f1,
        params["f2w"].T, params["f2b"].T,
        params["d1w"].T, params["d1b"].T,
        params["d2w"].T, params["d2b"].T,
    ]
    return weights, 3 * E


# -----------------------------------------------------------------------------
# Wrapper: feature packing / broadcast / pad, pallas_call, output permute.
# -----------------------------------------------------------------------------
def dymfusion_forward(inputs, params, hp, *, tm=512):
    hist = inputs["hist_demand"]        # (B, T_hist, S, D_hd)
    weather = inputs["weather"]         # (B, T_w, D_w)
    poi = inputs["poi"]                 # (B, S, D_poi)
    ev = inputs["event_rt_current"]     # (B, D_ev)

    B, _, S, Dhd = hist.shape
    N = B * S
    P, Tg = hp["pred_seq_len"], hp["target_dim"]
    out_dim = P * Tg

    # MAFE on a sequence == Linear on the last timestep only; broadcast the
    # per-batch feeds (weather, dyn context) to every station and pack all raw
    # features of one (batch, station) row into a single vector.  Rows are then
    # laid out feature-major so the row axis sits on the 128-lane dimension.
    x_hd = hist[:, -1, :, :].reshape(N, Dhd)
    x_w = jnp.broadcast_to(weather[:, -1, None, :],
                           (B, S, weather.shape[-1])).reshape(N, -1)
    x_poi = poi.reshape(N, -1)
    x_ev = jnp.broadcast_to(ev[:, None, :], (B, S, ev.shape[-1])).reshape(N, -1)
    x_all = jnp.concatenate([x_hd, x_w, x_poi, x_ev], axis=-1).astype(jnp.float32)
    x_t = x_all.T                                                  # (Din, N)
    Din = x_t.shape[0]

    # Row tiling: one block when the problem fits a tile; otherwise 128-aligned
    # tiles (lane-aligned blocks) with >=2 grid steps for TensorCore sharding.
    if N <= tm:
        tm_eff = _round_up(N, 8)
        n_blocks = 1
    else:
        tm_eff = _round_up(tm, 128)
        n_blocks = pl.cdiv(N, tm_eff)
    Np = n_blocks * tm_eff
    if Np != N:
        x_t = jnp.pad(x_t, ((0, 0), (0, Np - N)))

    weights, n_gated = pack_params(params)

    full_spec = lambda a: pl.BlockSpec(a.shape, lambda i: (0, 0))
    in_specs = [pl.BlockSpec((Din, tm_eff), lambda i: (0, i))]
    in_specs += [full_spec(w) for w in weights]

    out_t = pl.pallas_call(
        functools.partial(_dymfusion_kernel, n_gated=n_gated),
        out_shape=jax.ShapeDtypeStruct((out_dim, Np), jnp.float32),
        grid=(n_blocks,),
        in_specs=in_specs,
        out_specs=pl.BlockSpec((out_dim, tm_eff), lambda i: (0, i)),
        compiler_params=pltpu.CompilerParams(dimension_semantics=("parallel",)),
    )(x_t, *weights)

    # (out_dim, Np) -> (N, out_dim) -> (B, S, P, Tg) -> (B, P, S, Tg)
    # (matches PredictiveDecoder's .view(B,S,P,Tg).permute(0,2,1,3)).
    out = out_t.T[:N]
    return out.reshape(B, S, P, Tg).transpose(0, 2, 1, 3)


# -----------------------------------------------------------------------------
# Pure-JAX reference of the same forward (for correctness check).
# -----------------------------------------------------------------------------
def reference_forward(inputs, params, hp):
    relu = lambda v: jnp.maximum(v, 0.0)
    sig = jax.nn.sigmoid
    p = params
    hist, weather, poi, ev = (inputs["hist_demand"], inputs["weather"],
                              inputs["poi"], inputs["event_rt_current"])
    B, _, S, _ = hist.shape
    f_hd = relu(hist[:, -1, :, :] @ p["whd"] + p["bhd"])                 # (B, S, E)
    f_w = relu(weather[:, -1, :] @ p["ww"] + p["bw"])                    # (B, E)
    f_w = jnp.broadcast_to(f_w[:, None, :], (B, S, f_w.shape[-1]))
    f_p = relu(poi @ p["wp"] + p["bp"])                                  # (B, S, E)
    cdyn = relu(ev @ p["wev"] + p["bev"])                                # (B, C)
    cdyn = jnp.broadcast_to(cdyn[:, None, :], (B, S, cdyn.shape[-1]))

    g_hd = sig(f_hd @ p["ghdf"] + cdyn @ p["ghdc"] + p["ghdb"]) * f_hd
    g_w = sig(f_w @ p["gwf"] + cdyn @ p["gwc"] + p["gwb"]) * f_w
    g_p = sig(f_p @ p["gpf"] + cdyn @ p["gpc"] + p["gpb"]) * f_p

    h1 = relu(g_hd @ p["f1hd"] + g_w @ p["f1w"] + g_p @ p["f1p"] + p["f1b"])
    fused = relu(h1 @ p["f2w"] + p["f2b"])

    ph = relu(fused @ p["d1w"] + p["d1b"])
    out = ph @ p["d2w"] + p["d2b"]
    P, Tg = hp["pred_seq_len"], hp["target_dim"]
    return out.reshape(B, S, P, Tg).transpose(0, 2, 1, 3)


# -----------------------------------------------------------------------------
# Deterministic parameter init (same parameterization as the PyTorch module).
# -----------------------------------------------------------------------------
def init_params(key, dims, hp):
    E, C, F, H = hp["mafe_embed_dim"], hp["cdyn_dim"], hp["fused_dim"], hp["pd_hidden_dim"]
    P, Tg = hp["pred_seq_len"], hp["target_dim"]
    shapes = {
        "whd": (dims["hist_demand_dim"], E), "bhd": (1, E),
        "ww": (dims["weather_dim"], E), "bw": (1, E),
        "wp": (dims["poi_dim"], E), "bp": (1, E),
        "wev": (dims["event_rt_dim"], C), "bev": (1, C),
        "ghdf": (E, E), "ghdc": (C, E), "ghdb": (1, E),
        "gwf": (E, E), "gwc": (C, E), "gwb": (1, E),
        "gpf": (E, E), "gpc": (C, E), "gpb": (1, E),
        "f1hd": (E, 2 * F), "f1w": (E, 2 * F), "f1p": (E, 2 * F), "f1b": (1, 2 * F),
        "f2w": (2 * F, F), "f2b": (1, F),
        "d1w": (F, H), "d1b": (1, H),
        "d2w": (H, P * Tg), "d2b": (1, P * Tg),
    }
    params = {}
    keys = jax.random.split(key, len(shapes))
    for k_name, k_rng in zip(shapes, keys):
        fan_in = shapes[k_name][0]
        params[k_name] = (jax.random.normal(k_rng, shapes[k_name], jnp.float32)
                          * (1.0 / jnp.sqrt(jnp.float32(max(fan_in, 1)))))
    return params


# -----------------------------------------------------------------------------
if __name__ == "__main__":
    hp = dict(mafe_embed_dim=16, cdyn_dim=8, stga_out_dim=16, fused_dim=32,
              pd_hidden_dim=32, pred_seq_len=4, target_dim=1,
              stga_gat_out_channels_per_head=8, stga_gat_heads=2,
              stga_lstm_hidden_dim=16)
    dims = dict(num_zones=8, hist_demand_dim=4, weather_dim=5, poi_dim=7,
                event_rt_dim=3, static_attr_dim=2)

    key = jax.random.PRNGKey(0)
    k_par, k_in1, k_in2 = jax.random.split(key, 3)
    params = init_params(k_par, dims, hp)

    def make_inputs(k, B, S, T_hist, T_w):
        k_hd, k_w, k_poi, k_ev = jax.random.split(k, 4)
        return {
            "hist_demand": jax.random.normal(
                k_hd, (B, T_hist, S, dims["hist_demand_dim"]), jnp.float32),
            "weather": jax.random.normal(k_w, (B, T_w, dims["weather_dim"]), jnp.float32),
            "poi": jax.random.normal(k_poi, (B, S, dims["poi_dim"]), jnp.float32),
            "event_rt_current": jax.random.normal(k_ev, (B, dims["event_rt_dim"]), jnp.float32),
        }

    # 1) Small shapes (single-block path): B=2, S=8 -> 16 rows.
    inputs_small = make_inputs(k_in1, 2, dims["num_zones"], 6, 6)
    out = jax.block_until_ready(dymfusion_forward(inputs_small, params, hp))
    ref = reference_forward(inputs_small, params, hp)
    assert out.shape == (2, hp["pred_seq_len"], dims["num_zones"], hp["target_dim"]), out.shape
    assert jnp.allclose(out, ref, atol=1e-4, rtol=1e-4), float(jnp.max(jnp.abs(out - ref)))

    # 2) More rows (multi-block + padded path): B=50, S=8 -> 400 rows, tm=128 -> 4 blocks.
    inputs_big = make_inputs(k_in2, 50, dims["num_zones"], 6, 6)
    out2 = jax.block_until_ready(dymfusion_forward(inputs_big, params, hp, tm=128))
    ref2 = reference_forward(inputs_big, params, hp)
    assert out2.shape == (50, hp["pred_seq_len"], dims["num_zones"], hp["target_dim"]), out2.shape
    assert jnp.allclose(out2, ref2, atol=1e-4, rtol=1e-4), float(jnp.max(jnp.abs(out2 - ref2)))

    print("KERNEL_OK")
</pallas_src>

<mosaic_0001>
module attributes {stable_mosaic.version = 11 : i64} {
  func.func @_dymfusion_kernel(%arg0: i32, %arg1: memref<19x16xf32, #tpu.memory_space<vmem>>, %arg2: memref<56x19xf32, #tpu.memory_space<vmem>>, %arg3: memref<56x1xf32, #tpu.memory_space<vmem>>, %arg4: memref<48x56xf32, #tpu.memory_space<vmem>>, %arg5: memref<48x1xf32, #tpu.memory_space<vmem>>, %arg6: memref<64x48xf32, #tpu.memory_space<vmem>>, %arg7: memref<64x1xf32, #tpu.memory_space<vmem>>, %arg8: memref<32x64xf32, #tpu.memory_space<vmem>>, %arg9: memref<32x1xf32, #tpu.memory_space<vmem>>, %arg10: memref<32x32xf32, #tpu.memory_space<vmem>>, %arg11: memref<32x1xf32, #tpu.memory_space<vmem>>, %arg12: memref<4x32xf32, #tpu.memory_space<vmem>>, %arg13: memref<4x1xf32, #tpu.memory_space<vmem>>, %arg14: memref<4x16xf32, #tpu.memory_space<vmem>>) attributes {dimension_semantics = [#tpu.dimension_semantics<parallel>], iteration_bounds = array<i64: 1>, scalar_prefetch = 0 : i64, scratch_operands = 0 : i64, tpu.core_type = #tpu.core_type<tc>, window_params = [{transform_indices = @transform_0, window_bounds = array<i64: 19, 16>}, {pipeline_mode = #tpu.pipeline_mode<synchronous>, transform_indices = @transform_1, window_bounds = array<i64: 56, 19>}, {pipeline_mode = #tpu.pipeline_mode<synchronous>, transform_indices = @transform_2, window_bounds = array<i64: 56, 1>}, {pipeline_mode = #tpu.pipeline_mode<synchronous>, transform_indices = @transform_3, window_bounds = array<i64: 48, 56>}, {pipeline_mode = #tpu.pipeline_mode<synchronous>, transform_indices = @transform_4, window_bounds = array<i64: 48, 1>}, {pipeline_mode = #tpu.pipeline_mode<synchronous>, transform_indices = @transform_5, window_bounds = array<i64: 64, 48>}, {pipeline_mode = #tpu.pipeline_mode<synchronous>, transform_indices = @transform_6, window_bounds = array<i64: 64, 1>}, {pipeline_mode = #tpu.pipeline_mode<synchronous>, transform_indices = @transform_7, window_bounds = array<i64: 32, 64>}, {pipeline_mode = #tpu.pipeline_mode<synchronous>, transform_indices = @transform_8, window_bounds = array<i64: 32, 1>}, {pipeline_mode = #tpu.pipeline_mode<synchronous>, transform_indices = @transform_9, window_bounds = array<i64: 32, 32>}, {pipeline_mode = #tpu.pipeline_mode<synchronous>, transform_indices = @transform_10, window_bounds = array<i64: 32, 1>}, {pipeline_mode = #tpu.pipeline_mode<synchronous>, transform_indices = @transform_11, window_bounds = array<i64: 4, 32>}, {pipeline_mode = #tpu.pipeline_mode<synchronous>, transform_indices = @transform_12, window_bounds = array<i64: 4, 1>}, {transform_indices = @transform_13, window_bounds = array<i64: 4, 16>}]} {
    %c0 = arith.constant 0 : index
    %c0_0 = arith.constant 0 : index
    %0 = vector.load %arg1[%c0, %c0_0] : memref<19x16xf32, #tpu.memory_space<vmem>>, vector<19x16xf32>
    %c0_1 = arith.constant 0 : index
    %c0_2 = arith.constant 0 : index
    %1 = vector.load %arg2[%c0_1, %c0_2] : memref<56x19xf32, #tpu.memory_space<vmem>>, vector<56x19xf32>
    %cst = arith.constant dense<0.000000e+00> : vector<56x16xf32>
    %2 = tpu.matmul %1, %0, %cst {dimension_numbers = #tpu.dot_dimension_numbers<[1], [0], [0], [1], [0, 0, 1, 1], [], []>} : vector<56x19xf32>, vector<19x16xf32>, vector<56x16xf32> -> vector<56x16xf32>
    %c0_3 = arith.constant 0 : index
    %c0_4 = arith.constant 0 : index
    %3 = vector.load %arg3[%c0_3, %c0_4] : memref<56x1xf32, #tpu.memory_space<vmem>>, vector<56x1xf32>
    %4 = vector.broadcast %3 : vector<56x1xf32> to vector<56x16xf32>
    %5 = arith.addf %2, %4 : vector<56x16xf32>
    %cst_5 = arith.constant 0.000000e+00 : f32
    %6 = vector.broadcast %cst_5 : f32 to vector<56x16xf32>
    %7 = arith.maximumf %5, %6 : vector<56x16xf32>
    %8 = vector.extract_strided_slice %7 {offsets = [0, 0], sizes = [48, 16], strides = [1, 1]} : vector<56x16xf32> to vector<48x16xf32>
    %c0_6 = arith.constant 0 : index
    %c0_7 = arith.constant 0 : index
    %9 = vector.load %arg4[%c0_6, %c0_7] : memref<48x56xf32, #tpu.memory_space<vmem>>, vector<48x56xf32>
    %cst_8 = arith.constant dense<0.000000e+00> : vector<48x16xf32>
    %10 = tpu.matmul %9, %7, %cst_8 {dimension_numbers = #tpu.dot_dimension_numbers<[1], [0], [0], [1], [0, 0, 1, 1], [], []>} : vector<48x56xf32>, vector<56x16xf32>, vector<48x16xf32> -> vector<48x16xf32>
    %c0_9 = arith.constant 0 : index
    %c0_10 = arith.constant 0 : index
    %11 = vector.load %arg5[%c0_9, %c0_10] : memref<48x1xf32, #tpu.memory_space<vmem>>, vector<48x1xf32>
    %12 = vector.broadcast %11 : vector<48x1xf32> to vector<48x16xf32>
    %13 = arith.addf %10, %12 : vector<48x16xf32>
    %14 = arith.negf %13 : vector<48x16xf32>
    %15 = math.exp %14 : vector<48x16xf32>
    %cst_11 = arith.constant 1.000000e+00 : f32
    %16 = vector.broadcast %cst_11 : f32 to vector<48x16xf32>
    %17 = arith.addf %16, %15 : vector<48x16xf32>
    %18 = arith.divf %16, %17 : vector<48x16xf32>
    %19 = arith.mulf %18, %8 : vector<48x16xf32>
    %c0_12 = arith.constant 0 : index
    %c0_13 = arith.constant 0 : index
    %20 = vector.load %arg6[%c0_12, %c0_13] : memref<64x48xf32, #tpu.memory_space<vmem>>, vector<64x48xf32>
    %cst_14 = arith.constant dense<0.000000e+00> : vector<64x16xf32>
    %21 = tpu.matmul %20, %19, %cst_14 {dimension_numbers = #tpu.dot_dimension_numbers<[1], [0], [0], [1], [0, 0, 1, 1], [], []>} : vector<64x48xf32>, vector<48x16xf32>, vector<64x16xf32> -> vector<64x16xf32>
    %c0_15 = arith.constant 0 : index
    %c0_16 = arith.constant 0 : index
    %22 = vector.load %arg7[%c0_15, %c0_16] : memref<64x1xf32, #tpu.memory_space<vmem>>, vector<64x1xf32>
    %23 = vector.broadcast %22 : vector<64x1xf32> to vector<64x16xf32>
    %24 = arith.addf %21, %23 : vector<64x16xf32>
    %cst_17 = arith.constant 0.000000e+00 : f32
    %25 = vector.broadcast %cst_17 : f32 to vector<64x16xf32>
    %26 = arith.maximumf %24, %25 : vector<64x16xf32>
    %c0_18 = arith.constant 0 : index
    %c0_19 = arith.constant 0 : index
    %27 = vector.load %arg8[%c0_18, %c0_19] : memref<32x64xf32, #tpu.memory_space<vmem>>, vector<32x64xf32>
    %cst_20 = arith.constant dense<0.000000e+00> : vector<32x16xf32>
    %28 = tpu.matmul %27, %26, %cst_20 {dimension_numbers = #tpu.dot_dimension_numbers<[1], [0], [0], [1], [0, 0, 1, 1], [], []>} : vector<32x64xf32>, vector<64x16xf32>, vector<32x16xf32> -> vector<32x16xf32>
    %c0_21 = arith.constant 0 : index
    %c0_22 = arith.constant 0 : index
    %29 = vector.load %arg9[%c0_21, %c0_22] : memref<32x1xf32, #tpu.memory_space<vmem>>, vector<32x1xf32>
    %30 = vector.broadcast %29 : vector<32x1xf32> to vector<32x16xf32>
    %31 = arith.addf %28, %30 : vector<32x16xf32>
    %cst_23 = arith.constant 0.000000e+00 : f32
    %32 = vector.broadcast %cst_23 : f32 to vector<32x16xf32>
    %33 = arith.maximumf %31, %32 : vector<32x16xf32>
    %c0_24 = arith.constant 0 : index
    %c0_25 = arith.constant 0 : index
    %34 = vector.load %arg10[%c0_24, %c0_25] : memref<32x32xf32, #tpu.memory_space<vmem>>, vector<32x32xf32>
    %cst_26 = arith.constant dense<0.000000e+00> : vector<32x16xf32>
    %35 = tpu.matmul %34, %33, %cst_26 {dimension_numbers = #tpu.dot_dimension_numbers<[1], [0], [0], [1], [0, 0, 1, 1], [], []>} : vector<32x32xf32>, vector<32x16xf32>, vector<32x16xf32> -> vector<32x16xf32>
    %c0_27 = arith.constant 0 : index
    %c0_28 = arith.constant 0 : index
    %36 = vector.load %arg11[%c0_27, %c0_28] : memref<32x1xf32, #tpu.memory_space<vmem>>, vector<32x1xf32>
    %37 = vector.broadcast %36 : vector<32x1xf32> to vector<32x16xf32>
    %38 = arith.addf %35, %37 : vector<32x16xf32>
    %cst_29 = arith.constant 0.000000e+00 : f32
    %39 = vector.broadcast %cst_29 : f32 to vector<32x16xf32>
    %40 = arith.maximumf %38, %39 : vector<32x16xf32>
    %c0_30 = arith.constant 0 : index
    %c0_31 = arith.constant 0 : index
    %41 = vector.load %arg12[%c0_30, %c0_31] : memref<4x32xf32, #tpu.memory_space<vmem>>, vector<4x32xf32>
    %cst_32 = arith.constant dense<0.000000e+00> : vector<4x16xf32>
    %42 = tpu.matmul %41, %40, %cst_32 {dimension_numbers = #tpu.dot_dimension_numbers<[1], [0], [0], [1], [0, 0, 1, 1], [], []>} : vector<4x32xf32>, vector<32x16xf32>, vector<4x16xf32> -> vector<4x16xf32>
    %c0_33 = arith.constant 0 : index
    %c0_34 = arith.constant 0 : index
    %43 = vector.load %arg13[%c0_33, %c0_34] : memref<4x1xf32, #tpu.memory_space<vmem>>, vector<4x1xf32>
    %44 = vector.broadcast %43 : vector<4x1xf32> to vector<4x16xf32>
    %45 = arith.addf %42, %44 : vector<4x16xf32>
    %c0_35 = arith.constant 0 : index
    %c0_36 = arith.constant 0 : index
    %46 = vector.load %arg14[%c0_35, %c0_36] : memref<4x16xf32, #tpu.memory_space<vmem>>, vector<4x16xf32>
    tpu.vector_store %arg14[%c0_35, %c0_36], %45 {strides = array<i32>} : memref<4x16xf32, #tpu.memory_space<vmem>>, vector<4x16xf32>,
    return
  }
  func.func @transform_0(%arg0: i32) -> (i32, i32) {
    %c0_i32 = arith.constant 0 : i32
    %c0_i32_0 = arith.constant 0 : i32
    return %c0_i32, %arg0 : i32, i32
  }
  func.func @transform_1(%arg0: i32) -> (i32, i32) {
    %c0_i32 = arith.constant 0 : i32
    %c0_i32_0 = arith.constant 0 : i32
    %c0_i32_1 = arith.constant 0 : i32
    return %c0_i32, %c0_i32_0 : i32, i32
  }
  func.func @transform_2(%arg0: i32) -> (i32, i32) {
    %c0_i32 = arith.constant 0 : i32
    %c0_i32_0 = arith.constant 0 : i32
    %c0_i32_1 = arith.constant 0 : i32
    return %c0_i32, %c0_i32_0 : i32, i32
  }
  func.func @transform_3(%arg0: i32) -> (i32, i32) {
    %c0_i32 = arith.constant 0 : i32
    %c0_i32_0 = arith.constant 0 : i32
    %c0_i32_1 = arith.constant 0 : i32
    return %c0_i32, %c0_i32_0 : i32, i32
  }
  func.func @transform_4(%arg0: i32) -> (i32, i32) {
    %c0_i32 = arith.constant 0 : i32
    %c0_i32_0 = arith.constant 0 : i32
    %c0_i32_1 = arith.constant 0 : i32
    return %c0_i32, %c0_i32_0 : i32, i32
  }
  func.func @transform_5(%arg0: i32) -> (i32, i32) {
    %c0_i32 = arith.constant 0 : i32
    %c0_i32_0 = arith.constant 0 : i32
    %c0_i32_1 = arith.constant 0 : i32
    return %c0_i32, %c0_i32_0 : i32, i32
  }
  func.func @transform_6(%arg0: i32) -> (i32, i32) {
    %c0_i32 = arith.constant 0 : i32
    %c0_i32_0 = arith.constant 0 : i32
    %c0_i32_1 = arith.constant 0 : i32
    return %c0_i32, %c0_i32_0 : i32, i32
  }
  func.func @transform_7(%arg0: i32) -> (i32, i32) {
    %c0_i32 = arith.constant 0 : i32
    %c0_i32_0 = arith.constant 0 : i32
    %c0_i32_1 = arith.constant 0 : i32
    return %c0_i32, %c0_i32_0 : i32, i32
  }
  func.func @transform_8(%arg0: i32) -> (i32, i32) {
    %c0_i32 = arith.constant 0 : i32
    %c0_i32_0 = arith.constant 0 : i32
    %c0_i32_1 = arith.constant 0 : i32
    return %c0_i32, %c0_i32_0 : i32, i32
  }
  func.func @transform_9(%arg0: i32) -> (i32, i32) {
    %c0_i32 = arith.constant 0 : i32
    %c0_i32_0 = arith.constant 0 : i32
    %c0_i32_1 = arith.constant 0 : i32
    return %c0_i32, %c0_i32_0 : i32, i32
  }
  func.func @transform_10(%arg0: i32) -> (i32, i32) {
    %c0_i32 = arith.constant 0 : i32
    %c0_i32_0 = arith.constant 0 : i32
    %c0_i32_1 = arith.constant 0 : i32
    return %c0_i32, %c0_i32_0 : i32, i32
  }
  func.func @transform_11(%arg0: i32) -> (i32, i32) {
    %c0_i32 = arith.constant 0 : i32
    %c0_i32_0 = arith.constant 0 : i32
    %c0_i32_1 = arith.constant 0 : i32
    return %c0_i32, %c0_i32_0 : i32, i32
  }
  func.func @transform_12(%arg0: i32) -> (i32, i32) {
    %c0_i32 = arith.constant 0 : i32
    %c0_i32_0 = arith.constant 0 : i32
    %c0_i32_1 = arith.constant 0 : i32
    return %c0_i32, %c0_i32_0 : i32, i32
  }
  func.func @transform_13(%arg0: i32) -> (i32, i32) {
    %c0_i32 = arith.constant 0 : i32
    %c0_i32_0 = arith.constant 0 : i32
    return %c0_i32, %arg0 : i32, i32
  }
}

</mosaic_0001>

<bundles_post_ra>
// kernel: tpu_custom_call.1
= control target key start
LH: loop header
LB: loop body
LE: loop exit
PB: predicated region body
PF: predicated region fallthrough
CT: control target
= control target key end

     0   :  { %vm119_vm0 = vcmask 1042432   ;;  %v810_v3 = vmov 0   ;;  %vm97_vm1 = vcmask 154624   ;;  %s1237_s0 = inlined_call_operand.vmem [shape: f32[19,16], index: 0, kind: input, shape index: {}]   ;;  %s1238_s1 = inlined_call_operand.vmem [shape: f32[56,19], index: 1, kind: input, shape index: {}]   ;;  %s1239_s2 = inlined_call_operand.vmem [shape: f32[56,1], index: 2, kind: input, shape index: {}]   ;;  %s1240_s3 = inlined_call_operand.vmem [shape: f32[48,56], index: 3, kind: input, shape index: {}]   ;;  %s1241_s4 = inlined_call_operand.vmem [shape: f32[48,1], index: 4, kind: input, shape index: {}]   ;;  %s1242_s5 = inlined_call_operand.vmem [shape: f32[64,48], index: 5, kind: input, shape index: {}]   ;;  %s1243_s6 = inlined_call_operand.vmem [shape: f32[64,1], index: 6, kind: input, shape index: {}]   ;;  %s1244_s7 = inlined_call_operand.vmem [shape: f32[32,64], index: 7, kind: input, shape index: {}]   ;;  %s1245_s8 = inlined_call_operand.vmem [shape: f32[32,1], index: 8, kind: input, shape index: {}]   ;;  %s1246_s9 = inlined_call_operand.vmem [shape: f32[32,32], index: 9, kind: input, shape index: {}]   ;;  %s1247_s10 = inlined_call_operand.vmem [shape: f32[32,1], index: 10, kind: input, shape index: {}]   ;;  %s1248_s11 = inlined_call_operand.vmem [shape: f32[4,32], index: 11, kind: input, shape index: {}]   ;;  %s1249_s12 = inlined_call_operand.vmem [shape: f32[4,1], index: 12, kind: input, shape index: {}]   ;;  %s1250_s13 = inlined_call_operand.hbm [shape: f32[4,16], index: 13, kind: output, shape index: {}]  }
   0x1   :  { %v47_v0 = vld [vmem:[%s1237_s0 + $0x10] sm:$0x7]  ;;  %v59_v2 = vld [vmem:[%s1239_s2 + $0x20] sm:$0xff]  ;;  %758 = vset.pattern.permute.xlu1 %v810_v3  ;;  %757 = vset.pattern.permute.xlu0 %v810_v3  ;;  %v46_v4 = vld [vmem:[%s1237_s0 + $0x8] sm:$0xff] }
   0x2   :  { %v61_v1 = vld [vmem:[%s1239_s2 + $0x30] sm:$0xff]  ;;  %710 = vmatpush.msk.msra.mxu0 %vm119_vm0, %v47_v0  ;;  %84 = vperm.xlu1 %758, %v59_v2   ;;  %v45_v5 = vld [vmem:[%s1237_s0] sm:$0xff]  ;;  %v60_v8 = vld [vmem:[%s1239_s2 + $0x28] sm:$0xff] }
   0x3   :  { %94 = vperm.xlu0 %757, %v61_v1   ;;  %759 = vset.pattern.permute.xlu2 %v810_v3  ;;  %v57_v6 = vld [vmem:[%s1239_s2 + $0x10] sm:$0xff]  ;;  %v48_v7 = vld [vmem:[%s1238_s1] sm:$0xff] }
   0x4   :  { %137 = vmatpush.msra.mxu0 %v46_v4  ;;  %74 = vperm.xlu2 %759, %v57_v6  }
   0x6   :  { %138 = vmatpush.msra.mxu0 %v45_v5 }
   0x7   :  { %711 = vmatmul.msk.f32.vlgmr.msra.gmra.mxu0 %vm97_vm1, %v48_v7 }
   0x8   :  { %18 = vsyncpa [#allocation3], 0  ;;  %v58_v9 = vld [vmem:[%s1239_s2 + $0x18] sm:$0xff]  ;;  %v56_v10 = vld [vmem:[%s1239_s2 + $0x8] sm:$0xff]  ;;  %vm210_vm2 = vcmask 457728   ;;  %s811_s19 = smov [#allocation2]  }
   0x9   :  { %v49_v11 = vld [vmem:[%s1238_s1 + $0x8] sm:$0xff]  ;;  %v55_v12 = vld [vmem:[%s1239_s2] sm:$0xff]  ;;  %v50_v15 = vld [vmem:[%s1238_s1 + $0x10] sm:$0xff]  ;;  %s699_s20 = sshll.u32 %s811_s19, 4  ;;  %s701_s22 = sshll.u32 %s1250_s13, 4  ;;  %s700_s20 = int_to_ptr.vmem [resolvable:$true] %s699_s20  ;;  %s702_s22 = int_to_ptr.hbm [resolvable:$true] %s701_s22 }
   0xa   :  { %79 = vperm.xlu1 %758, %v58_v9   ;;  %v179_v13 = vld [vmem:[%s1241_s4 + $0x28] sm:$0xff]  ;;  %v178_v14 = vld [vmem:[%s1241_s4 + $0x20] sm:$0xff]  ;;  %v177_v16 = vld [vmem:[%s1241_s4 + $0x18] sm:$0xff] }
   0xb   :  { %89 = vperm.xlu0 %757, %v60_v8   ;;  %v176_v17 = vld [vmem:[%s1241_s4 + $0x10] sm:$0xff]  ;;  %v175_v18 = vld [vmem:[%s1241_s4 + $0x8] sm:$0xff]  ;;  %v51_v19 = vld [vmem:[%s1238_s1 + $0x18] sm:$0xff] }
   0xc   :  { %69 = vperm.xlu2 %759, %v56_v10   ;;  %v174_v20 = vld [vmem:[%s1241_s4] sm:$0xff]  ;;  %v399_v21 = vld [vmem:[%s1243_s6 + $0x38] sm:$0xff]  ;;  %v398_v22 = vld [vmem:[%s1243_s6 + $0x30] sm:$0xff] }
   0xd   :  { %v52_v23 = vld [vmem:[%s1238_s1 + $0x20] sm:$0xff]  ;;  %v397_v24 = vld [vmem:[%s1243_s6 + $0x28] sm:$0xff]  ;;  %v395_v26 = vld [vmem:[%s1243_s6 + $0x18] sm:$0xff] }
   0xe   :  { %v396_v25 = vld [vmem:[%s1243_s6 + $0x20] sm:$0xff]  ;;  %v53_v27 = vld [vmem:[%s1238_s1 + $0x28] sm:$0xff]  ;;  %v394_v28 = vld [vmem:[%s1243_s6 + $0x10] sm:$0xff] }
   0xf   :  { %712 = vmatmul.msk.f32.gmra.mxu0 %vm97_vm1, %v49_v11  ;;  %v393_v29 = vld [vmem:[%s1243_s6 + $0x8] sm:$0xff]  ;;  %v392_v30 = vld [vmem:[%s1243_s6] sm:$0xff]  ;;  %v54_v31 = vld [vmem:[%s1238_s1 + $0x30] sm:$0xff] }
  0x10   :  { %v521_v32 = vld [vmem:[%s1245_s8 + $0x18] sm:$0xff]  ;;  %v520_v33 = vld [vmem:[%s1245_s8 + $0x10] sm:$0xff]  ;;  %v519_v34 = vld [vmem:[%s1245_s8 + $0x8] sm:$0xff] }
  0x11   :  { %v518_v35 = vld [vmem:[%s1245_s8] sm:$0xff]  ;;  %v595_v36 = vld [vmem:[%s1247_s10 + $0x18] sm:$0xff]  ;;  %v594_v37 = vld [vmem:[%s1247_s10 + $0x10] sm:$0xff] }
  0x12   :  { %207 = vperm.xlu1 %758, %v179_v13   ;;  %v593_v38 = vld [vmem:[%s1247_s10 + $0x8] sm:$0xff]  ;;  %v592_v39 = vld [vmem:[%s1247_s10] sm:$0xff]  ;;  %v170_v7 = vld [vmem:[%s1240_s3 + $0x10] sm:$0xff] }
  0x13   :  { %64 = vperm.xlu0 %757, %v55_v12   ;;  %v663_v40 = vld [vmem:[%s1249_s12] sm:$0xf]  ;;  %v169_v6 = vld [vmem:[%s1240_s3 + $0x8] sm:$0xff]  ;;  %v171_v8 = vld [vmem:[%s1240_s3 + $0x18] sm:$0xff] }
  0x14   :  { %202 = vperm.xlu2 %759, %v178_v14   ;;  %v168_v5 = vld [vmem:[%s1240_s3] sm:$0xff]  ;;  %v173_v10 = vld [vmem:[%s1240_s3 + $0x28] sm:$0xff] }
  0x15   :  { %v172_v9 = vld [vmem:[%s1240_s3 + $0x20] sm:$0xff] }
  0x17   :  { %713 = vmatmul.msk.f32.gmra.mxu0 %vm97_vm1, %v50_v15 }
  0x1a   :  { %192 = vperm.xlu1 %758, %v176_v17  }
  0x1b   :  { %197 = vperm.xlu0 %757, %v177_v16  }
  0x1c   :  { %187 = vperm.xlu2 %759, %v175_v18  }
  0x1f   :  { %714 = vmatmul.msk.f32.gmra.mxu0 %vm97_vm1, %v51_v19 }
  0x22   :  { %437 = vperm.xlu1 %758, %v399_v21  }
  0x23   :  { %182 = vperm.xlu0 %757, %v174_v20  }
  0x24   :  { %432 = vperm.xlu2 %759, %v398_v22  }
  0x27   :  { %715 = vmatmul.msk.f32.gmra.mxu0 %vm97_vm1, %v52_v23 }
  0x2a   :  { %422 = vperm.xlu1 %758, %v396_v25  }
  0x2b   :  { %427 = vperm.xlu0 %757, %v397_v24  }
  0x2c   :  { %417 = vperm.xlu2 %759, %v395_v26  }
  0x2f   :  { %716 = vmatmul.msk.f32.gmra.mxu0 %vm97_vm1, %v53_v27 }
  0x32   :  { %407 = vperm.xlu1 %758, %v393_v29  }
  0x33   :  { %412 = vperm.xlu0 %757, %v394_v28  }
  0x34   :  { %402 = vperm.xlu2 %759, %v392_v30  }
  0x37   :  { %717 = vmatmul.msk.f32.gmra.mxu0 %vm97_vm1, %v54_v31 }
  0x3a   :  { %534 = vperm.xlu1 %758, %v520_v33  }
  0x3b   :  { %539 = vperm.xlu0 %757, %v521_v32  }
  0x3c   :  { %529 = vperm.xlu2 %759, %v519_v34  }
  0x42   :  { %613 = vperm.xlu1 %758, %v595_v36  }
  0x43   :  { %524 = vperm.xlu0 %757, %v518_v35  }
  0x44   :  { %608 = vperm.xlu2 %759, %v594_v37  }
  0x4a   :  { %598 = vperm.xlu1 %758, %v592_v39  }
  0x4b   :  { %603 = vperm.xlu0 %757, %v593_v38  }
  0x4c   :  { %666 = vperm.xlu2 %759, %v663_v40  }
  0x5e   :  { %v75_v49 = vpop.permute.xlu2 %74 }
  0x66   :  { %v70_v61 = vpop.permute.xlu2 %69 }
  0x6e   :  { %v203_v14 = vpop.permute.xlu2 %202 }
  0x74   :  { %v85_v48 = vpop.permute.xlu1 %84 }
  0x75   :  { %v95_v46 = vpop.permute.xlu0 %94 }
  0x76   :  { %v188_v18 = vpop.permute.xlu2 %187 }
  0x7c   :  { %v80_v56 = vpop.permute.xlu1 %79 }
  0x7d   :  { %v90_v50 = vpop.permute.xlu0 %89 }
  0x84   :  { %v140_v41 = vpop.f32.mrf.mxu0  ;;  %v208_v15 = vpop.permute.xlu1 %207 }
  0x85   :  { %v65_v62 = vpop.permute.xlu0 %64 }
  0x86   :  { %v1026_v1 = vadd.f32 %v140_v41, %v65_v62 }
  0x88   :  { %v161_v4 = vmax.f32 %v1026_v1, 0.0  ;;  %v387_v1 = vld [vmem:[%s1242_s5 + $0x18] sm:$0xff] }
  0x8c   :  { %v143_v42 = vpop.f32.mrf.mxu0  ;;  %v193_v20 = vpop.permute.xlu1 %192 }
  0x8d   :  { %v1021_v63 = vadd.f32 %v143_v42, %v70_v61  ;;  %v198_v13 = vpop.permute.xlu0 %197 }
  0x8f   :  { %v162_v3 = vmax.f32 %v1021_v63, 0.0  ;;  %v386_v63 = vld [vmem:[%s1242_s5 + $0x10] sm:$0xff] }
  0x94   :  { %v146_v43 = vpop.f32.mrf.mxu0 }
  0x95   :  { %v1016_v59 = vadd.f32 %v146_v43, %v75_v49  ;;  %v183_v17 = vpop.permute.xlu0 %182 }
  0x97   :  { %v163_v2 = vmax.f32 %v1016_v59, 0.0  ;;  %v385_v59 = vld [vmem:[%s1242_s5 + $0x8] sm:$0xff] }
  0x9c   :  { %v149_v44 = vpop.f32.mrf.mxu0 }
  0x9d   :  { %v1013_v57 = vadd.f32 %v149_v44, %v80_v56 }
  0x9f   :  { %v164_v0 = vmax.f32 %v1013_v57, 0.0 }
  0xa4   :  { %v152_v45 = vpop.f32.mrf.mxu0 }
  0xa5   :  { %v1011_v54 = vadd.f32 %v152_v45, %v85_v48 }
  0xa7   :  { %v165_v60 = vmax.f32 %v1011_v54, 0.0 }
  0xac   :  { %v155_v47 = vpop.f32.mrf.mxu0 }
  0xad   :  { %v1009_v52 = vadd.f32 %v155_v47, %v90_v50 }
  0xaf   :  { %v166_v58 = vmax.f32 %v1009_v52, 0.0 }
  0xb4   :  { %v158_v51 = vpop.f32.mrf.mxu0 }
  0xb5   :  { %v159_v53 = vadd.f32 %v158_v51, %v95_v46 }
  0xb7   :  { %v167_v55 = vmax.f32 %v159_v53, 0.0 }
  0xb9   :  { %238 = vmatpush.msra.mxu1 %v167_v55 }
  0xbb   :  { %239 = vmatpush.msra.mxu1 %v166_v58 }
  0xbd   :  { %240 = vmatpush.msra.mxu1 %v165_v60 }
  0xbf   :  { %241 = vmatpush.msra.mxu1 %v164_v0 }
  0xc1   :  { %242 = vmatpush.msra.mxu1 %v163_v2 }
  0xc3   :  { %243 = vmatpush.msra.mxu1 %v162_v3 }
  0xc5   :  { %244 = vmatpush.msra.mxu1 %v161_v4 }
  0xc6   :  { %718 = vmatmul.msk.f32.vlgmr.msra.gmra.mxu1 %vm210_vm2, %v168_v5 }
  0xce   :  { %719 = vmatmul.msk.f32.gmra.mxu1 %vm210_vm2, %v169_v6 }
  0xd6   :  { %720 = vmatmul.msk.f32.gmra.mxu1 %vm210_vm2, %v170_v7 }
  0xde   :  { %721 = vmatmul.msk.f32.gmra.mxu1 %vm210_vm2, %v171_v8 }
  0xe6   :  { %722 = vmatmul.msk.f32.gmra.mxu1 %vm210_vm2, %v172_v9 }
  0xee   :  { %723 = vmatmul.msk.f32.gmra.mxu1 %vm210_vm2, %v173_v10 }
 0x143   :  { %v246_v11 = vpop.f32.mrf.mxu1 }
 0x144   :  { %v247_v19 = vadd.f32 %v246_v11, %v183_v17 }
 0x146   :  { %v724_v23 = vmul.f32 -1.442695, %v247_v19 }
 0x148   :  { %760 = vpow2.f32 %v724_v23 }
 0x14b   :  { %v249_v12 = vpop.f32.mrf.mxu1 }
 0x14c   :  { %v250_v21 = vadd.f32 %v249_v12, %v188_v18 }
 0x14e   :  { %v725_v25 = vmul.f32 -1.442695, %v250_v21  ;;  %v761_v31 = vpop.eup %760 }
 0x14f   :  { %v1057_v36 = vadd.f32 1.0, %v761_v31 }
 0x150   :  { %762 = vpow2.f32 %v725_v25 }
 0x151   :  { %v299_v52 = vand.u32 2147483648, %v1057_v36 }
 0x153   :  { %v252_v16 = vpop.f32.mrf.mxu1 }
 0x154   :  { %v253_v22 = vadd.f32 %v252_v16, %v193_v20 }
 0x156   :  { %v726_v27 = vmul.f32 -1.442695, %v253_v22  ;;  %v763_v32 = vpop.eup %762 }
 0x157   :  { %v1059_v37 = vadd.f32 1.0, %v763_v32 }
 0x158   :  { %764 = vpow2.f32 %v726_v27 }
 0x159   :  { %v312_v12 = vand.u32 2147483647, %v1059_v37  ;;  %vm308_vm7 = vweird.f32 %v1059_v37 }
 0x15b   :  { %v255_v24 = vpop.f32.mrf.mxu1 }
 0x15c   :  { %v256_v26 = vadd.f32 %v255_v24, %v198_v13 }
 0x15e   :  { %v727_v28 = vmul.f32 -1.442695, %v256_v26  ;;  %v765_v34 = vpop.eup %764 }
 0x15f   :  { %v1061_v38 = vadd.f32 1.0, %v765_v34 }
 0x160   :  { %766 = vpow2.f32 %v727_v28 }
 0x161   :  { %vm323_vm4 = vweird.f32 %v1061_v38  ;;  %v327_v17 = vand.u32 2147483647, %v1061_v38 }
 0x163   :  { %v258_v29 = vpop.f32.mrf.mxu1 }
 0x164   :  { %v259_v30 = vadd.f32 %v258_v29, %v203_v14 }
 0x166   :  { %v728_v33 = vmul.f32 -1.442695, %v259_v30  ;;  %v767_v35 = vpop.eup %766 }
 0x167   :  { %v1063_v39 = vadd.f32 1.0, %v767_v35 }
 0x168   :  { %768 = vpow2.f32 %v728_v33 }
 0x169   :  { %770 = vrcp.f32 %v1057_v36  ;;  %vm338_vm12 = vweird.f32 %v1063_v39  ;;  %v342_v28 = vand.u32 2147483647, %v1063_v39  ;;  %v344_v29 = vand.u32 2147483648, %v1063_v39 }
 0x16a   :  { %772 = vrcp.f32 %v1059_v37 }
 0x16b   :  { %v261_v40 = vpop.f32.mrf.mxu1  ;;  %774 = vrcp.f32 %v1061_v38 }
 0x16c   :  { %v262_v41 = vadd.f32 %v261_v40, %v208_v15  ;;  %776 = vrcp.f32 %v1063_v39 }
 0x16e   :  { %v769_v42 = vpop.eup %768  ;;  %v729_v43 = vmul.f32 -1.442695, %v262_v41 }
 0x16f   :  { %v1069_v44 = vadd.f32 1.0, %v769_v42  ;;  %v1072_v45 = vpop.eup %770 }
 0x170   :  { %778 = vpow2.f32 %v729_v43  ;;  %v1074_v46 = vpop.eup %772  ;;  %v289_v56 = vmul.f32 %v1072_v45, %v1057_v36  ;;  %vm294_vm8 = vweird.f32 %v1072_v45 }
 0x171   :  { %780 = vrcp.f32 %v1069_v44  ;;  %v1076_v47 = vpop.eup %774  ;;  %v304_v62 = vmul.f32 %v1074_v46, %v1059_v37  ;;  %vm309_vm3 = vweird.f32 %v1074_v46  ;;  %vm353_vm9 = vweird.f32 %v1069_v44 }
 0x172   :  { %v1078_v48 = vpop.eup %776  ;;  %v319_v61 = vmul.f32 %v1076_v47, %v1061_v38  ;;  %v290_v7 = vsub.f32 1.0, %v289_v56  ;;  %v357_v22 = vand.u32 2147483647, %v1069_v44  ;;  %v359_v23 = vand.u32 2147483648, %v1069_v44 }
 0x173   :  { %v334_v55 = vmul.f32 %v1078_v48, %v1063_v39  ;;  %v305_v9 = vsub.f32 1.0, %v304_v62  ;;  %vm339_vm6 = vweird.f32 %v1078_v48  ;;  %vm324_vm13 = vweird.f32 %v1076_v47 }
 0x174   :  { %v320_v8 = vsub.f32 1.0, %v319_v61  ;;  %v291_v15 = vmul.f32 %v1072_v45, %v290_v7  ;;  %vm1116_vm15 = vmor %vm338_vm12, %vm339_vm6  ;;  %v360_v35 = vor.u32 1.1754944e-38, %v359_v23  ;;  %v329_v39 = vand.u32 2147483648, %v1061_v38 }
 0x175   :  { %v335_v6 = vsub.f32 1.0, %v334_v55  ;;  %v306_v18 = vmul.f32 %v1074_v46, %v305_v9  ;;  %vm358_vm2 = vcmp.eq.f32.partialorder %v357_v22, 8.507059e+37  ;;  %vm343_vm6 = vcmp.eq.f32.partialorder %v342_v28, 8.507059e+37 }
 0x176   :  { %v779_v49 = vpop.eup %778  ;;  %v321_v16 = vmul.f32 %v1076_v47, %v320_v8  ;;  %v292_v55 = vadd.f32 %v1072_v45, %v291_v15  ;;  %v330_v61 = vor.u32 1.1754944e-38, %v329_v39  ;;  %v297_v62 = vand.u32 2147483647, %v1057_v36  ;;  %v438_v15 = vpop.permute.xlu1 %437 }
 0x177   :  { %v781_v50 = vpop.eup %780  ;;  %v287_v51 = vadd.f32 1.0, %v779_v49  ;;  %v336_v14 = vmul.f32 %v1078_v48, %v335_v6  ;;  %v307_v40 = vadd.f32 %v1074_v46, %v306_v18  ;;  %v345_v49 = vor.u32 1.1754944e-38, %v344_v29  ;;  %v428_v18 = vpop.permute.xlu0 %427 }
 0x178   :  { %v349_v53 = vmul.f32 %v781_v50, %v1069_v44  ;;  %vm354_vm5 = vweird.f32 %v781_v50  ;;  %v322_v33 = vadd.f32 %v1076_v47, %v321_v16  ;;  %v300_v8 = vor.u32 1.1754944e-38, %v299_v52  ;;  %v433_v16 = vpop.permute.xlu2 %432 }
 0x179   :  { %782 = vrcp.f32 %v287_v51  ;;  %v374_v21 = vand.u32 2147483648, %v287_v51  ;;  %v372_v25 = vand.u32 2147483647, %v287_v51  ;;  %v337_v26 = vadd.f32 %v1078_v48, %v336_v14  ;;  %vm1104_vm11 = vmor %vm353_vm9, %vm354_vm5 }
 0x17a   :  { %v350_v5 = vsub.f32 1.0, %v349_v53  ;;  %vm368_vm14 = vweird.f32 %v287_v51  ;;  %vm1130_vm5 = vmor %vm323_vm4, %vm324_vm13  ;;  %vm293_vm9 = vweird.f32 %v1057_v36  ;;  %vm542_vm12 = vcmask 523264  }
 0x17b   :  { %v375_v34 = vor.u32 1.1754944e-38, %v374_v21  ;;  %vm373_vm1 = vcmp.eq.f32.partialorder %v372_v25, 8.507059e+37  ;;  %v341_v42 = vsel %vm1116_vm15, %v1078_v48, %v337_v26  ;;  %v326_v48 = vsel %vm1130_vm5, %v1076_v47, %v322_v33  ;;  %vm1145_vm4 = vmor %vm308_vm7, %vm309_vm3 }
 0x17c   :  { %v351_v10 = vmul.f32 %v781_v50, %v350_v5  ;;  %v346_v56 = vsel %vm343_vm6, %v345_v49, %v341_v42  ;;  %v311_v47 = vsel %vm1145_vm4, %v1074_v46, %v307_v40  ;;  %vm295_vm3 = vmor %vm293_vm9, %vm294_vm8  ;;  %vm313_vm7 = vcmp.eq.f32.partialorder %v312_v12, 8.507059e+37  ;;  %v515_v49 = vld [vmem:[%s1244_s7 + $0x8] sm:$0xff] }
 0x17d   :  { %v381_v7 = vmul.f32 %v346_v56, %v164_v0  ;;  %v296_v54 = vsel %vm295_vm3, %v1072_v45, %v292_v55  ;;  %v384_v0 = vld [vmem:[%s1242_s5] sm:$0xff]  ;;  %vm440_vm8 = vcmask 392192   ;;  %vm616_vm13 = vcmask 261120  }
 0x17e   :  { %v352_v20 = vadd.f32 %v781_v50, %v351_v10 }
 0x17f   :  { %v783_v11 = vpop.eup %782 }
 0x180   :  { %v364_v13 = vmul.f32 %v783_v11, %v287_v51  ;;  %vm369_vm10 = vweird.f32 %v783_v11  ;;  %v356_v31 = vsel %vm1104_vm11, %v781_v50, %v352_v20  ;;  %v314_v51 = vand.u32 2147483648, %v1059_v37  ;;  %v391_v37 = vld [vmem:[%s1242_s5 + $0x38] sm:$0xff]  ;;  %v418_v23 = vpop.permute.xlu2 %417  ;;  %v516_v50 = vld [vmem:[%s1244_s7 + $0x10] sm:$0xff] }
 0x181   :  { %vm370_vm0 = vmor %vm368_vm14, %vm369_vm10  ;;  %v361_v44 = vsel %vm358_vm2, %v360_v35, %v356_v31  ;;  %vm328_vm10 = vcmp.eq.f32.partialorder %v327_v17, 8.507059e+37  ;;  %vm298_vm11 = vcmp.eq.f32.partialorder %v297_v62, 8.507059e+37  ;;  %vm692_vm14 = vcmask 125952  }
 0x182   :  { %v365_v19 = vsub.f32 1.0, %v364_v13  ;;  %v331_v5 = vsel %vm328_vm10, %v330_v61, %v326_v48  ;;  %v315_v6 = vor.u32 1.1754944e-38, %v314_v51  ;;  %v301_v46 = vsel %vm298_vm11, %v300_v8, %v296_v54  ;;  %v517_v51 = vld [vmem:[%s1244_s7 + $0x18] sm:$0xff] }
 0x183   :  { %v380_v36 = vmul.f32 %v331_v5, %v163_v2  ;;  %v378_v57 = vmul.f32 %v301_v46, %v161_v4  ;;  %v388_v2 = vld [vmem:[%s1242_s5 + $0x20] sm:$0xff]  ;;  %v390_v4 = vld [vmem:[%s1242_s5 + $0x30] sm:$0xff]  ;;  %v589_v46 = vld [vmem:[%s1246_s9 + $0x8] sm:$0xff] }
 0x184   :  { %v366_v24 = vmul.f32 %v783_v11, %v365_v19  ;;  %v423_v19 = vpop.permute.xlu1 %422 }
 0x186   :  { %v367_v30 = vadd.f32 %v783_v11, %v366_v24 }
 0x188   :  { %v371_v41 = vsel %vm370_vm0, %v783_v11, %v367_v30  ;;  %v413_v30 = vpop.permute.xlu0 %412  ;;  %v403_v39 = vpop.permute.xlu2 %402 }
 0x189   :  { %v376_v43 = vsel %vm373_vm1, %v375_v34, %v371_v41 }
 0x18a   :  { %v383_v53 = vmul.f32 %v376_v43, %v166_v58  ;;  %v382_v58 = vmul.f32 %v361_v44, %v165_v60  ;;  %v316_v60 = vsel %vm313_vm7, %v315_v6, %v311_v47  ;;  %v514_v44 = vld [vmem:[%s1244_s7] sm:$0xff] }
 0x18b   :  { %v379_v9 = vmul.f32 %v316_v60, %v162_v3  ;;  %v389_v3 = vld [vmem:[%s1242_s5 + $0x28] sm:$0xff] }
 0x18c   :  { %475 = vmatpush.msra.mxu2 %v383_v53  ;;  %v408_v33 = vpop.permute.xlu1 %407 }
 0x18e   :  { %476 = vmatpush.msra.mxu2 %v382_v58 }
 0x190   :  { %477 = vmatpush.msra.mxu2 %v381_v7  ;;  %v540_v55 = vpop.permute.xlu0 %539  ;;  %v530_v58 = vpop.permute.xlu2 %529 }
 0x192   :  { %478 = vmatpush.msra.mxu2 %v380_v36  ;;  %v588_v36 = vld [vmem:[%s1246_s9] sm:$0xff] }
 0x194   :  { %479 = vmatpush.msra.mxu2 %v379_v9  ;;  %v535_v56 = vpop.permute.xlu1 %534  ;;  %v590_v9 = vld [vmem:[%s1246_s9 + $0x10] sm:$0xff] }
 0x196   :  { %480 = vmatpush.msra.mxu2 %v378_v57  ;;  %v591_v57 = vld [vmem:[%s1246_s9 + $0x18] sm:$0xff] }
 0x197   :  { %730 = vmatmul.msk.f32.vlgmr.msra.gmra.mxu2 %vm440_vm8, %v384_v0 }
 0x198   :  { %v525_v6 = vpop.permute.xlu0 %524 }
 0x19f   :  { %731 = vmatmul.msk.f32.gmra.mxu2 %vm440_vm8, %v385_v59 }
 0x1a7   :  { %732 = vmatmul.msk.f32.gmra.mxu2 %vm440_vm8, %v386_v63 }
 0x1af   :  { %733 = vmatmul.msk.f32.gmra.mxu2 %vm440_vm8, %v387_v1  ;;  %v614_v1 = vpop.permute.xlu1 %613 }
 0x1b7   :  { %734 = vmatmul.msk.f32.gmra.mxu2 %vm440_vm8, %v388_v2  ;;  %v609_v2 = vpop.permute.xlu2 %608 }
 0x1bf   :  { %735 = vmatmul.msk.f32.gmra.mxu2 %vm440_vm8, %v389_v3 }
 0x1c7   :  { %736 = vmatmul.msk.f32.gmra.mxu2 %vm440_vm8, %v390_v4 }
 0x1cf   :  { %737 = vmatmul.msk.f32.gmra.mxu2 %vm440_vm8, %v391_v37 }
 0x21a   :  { %v482_v45 = vpop.f32.mrf.mxu2 }
 0x21b   :  { %v483_v40 = vadd.f32 %v482_v45, %v403_v39  ;;  %v604_v45 = vpop.permute.xlu0 %603 }
 0x21d   :  { %v506_v43 = vmax.f32 %v483_v40, 0.0 }
 0x222   :  { %v485_v10 = vpop.f32.mrf.mxu2 }
 0x223   :  { %v486_v34 = vadd.f32 %v485_v10, %v408_v33 }
 0x225   :  { %v507_v42 = vmax.f32 %v486_v34, 0.0 }
 0x22a   :  { %v488_v11 = vpop.f32.mrf.mxu2 }
 0x22b   :  { %v489_v31 = vadd.f32 %v488_v11, %v413_v30 }
 0x22d   :  { %v508_v41 = vmax.f32 %v489_v31, 0.0 }
 0x232   :  { %v491_v12 = vpop.f32.mrf.mxu2 }
 0x233   :  { %v492_v28 = vadd.f32 %v491_v12, %v418_v23  ;;  %v599_v12 = vpop.permute.xlu1 %598 }
 0x235   :  { %v509_v35 = vmax.f32 %v492_v28, 0.0 }
 0x23a   :  { %v494_v13 = vpop.f32.mrf.mxu2 }
 0x23b   :  { %v495_v26 = vadd.f32 %v494_v13, %v423_v19 }
 0x23d   :  { %v510_v32 = vmax.f32 %v495_v26, 0.0 }
 0x242   :  { %v497_v14 = vpop.f32.mrf.mxu2 }
 0x243   :  { %v498_v24 = vadd.f32 %v497_v14, %v428_v18  ;;  %v667_v18 = vpop.permute.xlu2 %666 }
 0x245   :  { %v511_v29 = vmax.f32 %v498_v24, 0.0 }
 0x24a   :  { %v500_v17 = vpop.f32.mrf.mxu2 }
 0x24b   :  { %v501_v21 = vadd.f32 %v500_v17, %v433_v16  ;;  %v662_v17 = vld [vmem:[%s1248_s11] sm:$0xf] }
 0x24d   :  { %v512_v27 = vmax.f32 %v501_v21, 0.0 }
 0x252   :  { %v503_v20 = vpop.f32.mrf.mxu2 }
 0x253   :  { %v504_v22 = vadd.f32 %v503_v20, %v438_v15 }
 0x255   :  { %v513_v25 = vmax.f32 %v504_v22, 0.0 }
 0x257   :  { %563 = vmatpush.msrb.mxu1 %v513_v25  ;;  %747 = vmatpush.msra.mxu3 %v513_v25 }
 0x259   :  { %564 = vmatpush.msrb.mxu1 %v512_v27  ;;  %748 = vmatpush.msra.mxu3 %v512_v27 }
 0x25b   :  { %565 = vmatpush.msrb.mxu1 %v511_v29  ;;  %749 = vmatpush.msra.mxu3 %v511_v29 }
 0x25d   :  { %566 = vmatpush.msrb.mxu1 %v510_v32  ;;  %750 = vmatpush.msra.mxu3 %v510_v32 }
 0x25f   :  { %567 = vmatpush.msrb.mxu1 %v509_v35  ;;  %751 = vmatpush.msra.mxu3 %v509_v35 }
 0x261   :  { %568 = vmatpush.msrb.mxu1 %v508_v41  ;;  %752 = vmatpush.msra.mxu3 %v508_v41 }
 0x263   :  { %569 = vmatpush.msrb.mxu1 %v507_v42  ;;  %753 = vmatpush.msra.mxu3 %v507_v42 }
 0x265   :  { %570 = vmatpush.msrb.mxu1 %v506_v43  ;;  %754 = vmatpush.msra.mxu3 %v506_v43 }
 0x266   :  { %738 = vmatmul.msk.f32.vlgmr.msrb.gmra.mxu1 %vm542_vm12, %v514_v44  ;;  %739 = vmatmul.msk.f32.vlgmr.msra.gmra.mxu3 %vm542_vm12, %v515_v49 }
 0x26e   :  { %740 = vmatmul.msk.f32.gmra.mxu3 %vm542_vm12, %v516_v50 }
 0x276   :  { %741 = vmatmul.msk.f32.gmra.mxu3 %vm542_vm12, %v517_v51 }
 0x2e3   :  { %v572_v47 = vpop.f32.mrf.mxu1 }
 0x2e4   :  { %v573_v7 = vadd.f32 %v572_v47, %v525_v6 }
 0x2e6   :  { %v584_v8 = vmax.f32 %v573_v7, 0.0 }
 0x2e9   :  { %v575_v53 = vpop.f32.mrf.mxu3 }
 0x2ea   :  { %v576_v62 = vadd.f32 %v575_v53, %v530_v58 }
 0x2ec   :  { %v585_v60 = vmax.f32 %v576_v62, 0.0 }
 0x2f1   :  { %v578_v48 = vpop.f32.mrf.mxu3 }
 0x2f2   :  { %v579_v38 = vadd.f32 %v578_v48, %v535_v56 }
 0x2f4   :  { %v586_v54 = vmax.f32 %v579_v38, 0.0 }
 0x2f9   :  { %v581_v61 = vpop.f32.mrf.mxu3 }
 0x2fa   :  { %v582_v52 = vadd.f32 %v581_v61, %v540_v55 }
 0x2fc   :  { %v587_v5 = vmax.f32 %v582_v52, 0.0 }
 0x2fe   :  { %641 = vmatpush.msrb.mxu3 %v587_v5 }
 0x300   :  { %642 = vmatpush.msrb.mxu3 %v586_v54 }
 0x302   :  { %643 = vmatpush.msrb.mxu3 %v585_v60 }
 0x304   :  { %644 = vmatpush.msrb.mxu3 %v584_v8 }
 0x305   :  { %742 = vmatmul.msk.f32.vlgmr.msrb.gmra.mxu3 %vm616_vm13, %v588_v36 }
 0x30d   :  { %743 = vmatmul.msk.f32.gmra.mxu3 %vm616_vm13, %v589_v46 }
 0x315   :  { %744 = vmatmul.msk.f32.gmra.mxu3 %vm616_vm13, %v590_v9 }
 0x31d   :  { %745 = vmatmul.msk.f32.gmra.mxu3 %vm616_vm13, %v591_v57 }
 0x388   :  { %v646_v0 = vpop.f32.mrf.mxu3 }
 0x389   :  { %v647_v13 = vadd.f32 %v646_v0, %v599_v12 }
 0x38b   :  { %v658_v16 = vmax.f32 %v647_v13, 0.0 }
 0x390   :  { %v649_v59 = vpop.f32.mrf.mxu3 }
 0x391   :  { %v650_v10 = vadd.f32 %v649_v59, %v604_v45 }
 0x393   :  { %v659_v15 = vmax.f32 %v650_v10, 0.0 }
 0x398   :  { %v652_v63 = vpop.f32.mrf.mxu3 }
 0x399   :  { %v653_v4 = vadd.f32 %v652_v63, %v609_v2 }
 0x39b   :  { %v660_v14 = vmax.f32 %v653_v4, 0.0 }
 0x3a0   :  { %v655_v3 = vpop.f32.mrf.mxu3 }
 0x3a1   :  { %v656_v37 = vadd.f32 %v655_v3, %v614_v1 }
 0x3a3   :  { %v661_v11 = vmax.f32 %v656_v37, 0.0 }
 0x3a5   :  { %684 = vmatpush.msrb.mxu0 %v661_v11 }
 0x3a7   :  { %685 = vmatpush.msrb.mxu0 %v660_v14 }
 0x3a9   :  { %686 = vmatpush.msrb.mxu0 %v659_v15 }
 0x3ab   :  { %687 = vmatpush.msrb.mxu0 %v658_v16 }
 0x3ac   :  { %746 = vmatmul.msk.f32.vlgmr.msrb.gmra.mxu0 %vm616_vm13, %v662_v17 }
 0x429   :  { %v689_v19 = vpop.f32.mrf.mxu0 }
 0x42a   :  { %v690_v20 = vadd.f32 %v689_v19, %v667_v18 }
 0x42c   :  { %693 = vst.msk [vmem:[#allocation2] sm:$0xf] %vm692_vm14, %v690_v20 }
 0x42d   :  { %704 = dma.vmem_to_hbm [thread:$0]  %s700_s20, 64, %s702_s22, [#allocation3]  }
 0x42e   :  { %808 = dma.done.wait [#allocation3], 64  }
 0x42f   :  { %809 = vsyncadd [#allocation3], 4294967232 }
 0x430   :  { %709 = vsyncpa [#allocation3], 1 }

</bundles_post_ra>
